<compile_context>
chip_gen: v7x
topology: tpu7x:2x2x1
jax: 0.10.0
libtpu: 0.0.40
codegen_flags: <defaults>
</compile_context>

<pallas_src>
import jax
import jax.numpy as jnp
from jax.experimental import pallas as pl
from jax.experimental.pallas import tpu as pltpu

F_IN = 19        # true input features: [u, v, d, intrinsics(4), extrinsics(12)]
F_IN_PAD = 32    # padded K of fc1 (extra rows of w1 are zero)
F_H = 128        # fc1/fc2 width; fc3 width padded 64 -> 128
F_OUT = 9        # true output features
F_OUT_PAD = 128  # padded output width (lane-dense, unmasked stores)


def _round_up(n, m):
    return ((n + m - 1) // m) * m


def _mlp_kernel(x_ref,
                w1_ref, b1_ref,
                w2_ref, b2_ref,
                w3_ref, b3_ref,
                w4_ref, b4_ref,
                o_ref):
    # bf16 operands -> MXU with f32 accumulation; bias + ReLU in f32.
    x = x_ref[...]

    h = jnp.dot(x, w1_ref[...], preferred_element_type=jnp.float32) + b1_ref[...]
    h = jnp.maximum(h, 0.0)

    h = jnp.dot(h.astype(w2_ref.dtype), w2_ref[...],
                preferred_element_type=jnp.float32) + b2_ref[...]
    h = jnp.maximum(h, 0.0)

    h = jnp.dot(h.astype(w3_ref.dtype), w3_ref[...],
                preferred_element_type=jnp.float32) + b3_ref[...]
    h = jnp.maximum(h, 0.0)

    out = jnp.dot(h.astype(w4_ref.dtype), w4_ref[...],
                  preferred_element_type=jnp.float32) + b4_ref[...]
    o_ref[...] = out.astype(o_ref.dtype)


def init_params(key):
    """Deterministic PyTorch-Linear-style init: U(-1/sqrt(in), 1/sqrt(in)).

    Weights are stored (in, out), i.e. the transpose of torch's (out, in).
    """
    dims = [(19, 128), (128, 128), (128, 64), (64, 9)]
    params = []
    for i, (fin, fout) in enumerate(dims):
        kw, kb = jax.random.split(jax.random.fold_in(key, i))
        bound = 1.0 / jnp.sqrt(jnp.float32(fin))
        w = jax.random.uniform(kw, (fin, fout), jnp.float32, -bound, bound)
        b = jax.random.uniform(kb, (fout,), jnp.float32, -bound, bound)
        params.append((w, b))
    return params


def prepare_params(params, compute_dtype=jnp.bfloat16):
    """Zero-pad to MXU-friendly shapes; weights -> compute dtype, biases f32."""
    (w1, b1), (w2, b2), (w3, b3), (w4, b4) = params

    w1p = jnp.zeros((F_IN_PAD, F_H), jnp.float32).at[:F_IN, :].set(w1)
    b1p = b1.reshape(1, F_H).astype(jnp.float32)

    w2p = w2.astype(jnp.float32)
    b2p = b2.reshape(1, F_H).astype(jnp.float32)

    w3p = jnp.zeros((F_H, F_H), jnp.float32).at[:, :64].set(w3)
    b3p = jnp.zeros((1, F_H), jnp.float32).at[:, :64].set(b3.reshape(1, 64))

    w4p = jnp.zeros((F_H, F_OUT_PAD), jnp.float32).at[:64, :F_OUT].set(w4)
    b4p = jnp.zeros((1, F_OUT_PAD), jnp.float32).at[:, :F_OUT].set(b4.reshape(1, F_OUT))

    return ((w1p.astype(compute_dtype), b1p),
            (w2p.astype(compute_dtype), b2p),
            (w3p.astype(compute_dtype), b3p),
            (w4p.astype(compute_dtype), b4p))


def ellipsoid_net_forward(u, v, d, intrinsics, extrinsics, params,
                          *, block_b=512, compute_dtype=jnp.bfloat16):
    # Glue: concatenate along the feature axis (== torch.cat dim=1).
    x = jnp.concatenate([u, v, d, intrinsics, extrinsics], axis=1)  # (B, 19)
    B = x.shape[0]

    (w1, b1), (w2, b2), (w3, b3), (w4, b4) = prepare_params(params, compute_dtype)

    # Batch tile: big enough to pipeline, sized well under the v7x 64 MiB VMEM.
    tb = min(block_b, _round_up(B, 16))
    b_pad = _round_up(B, tb)

    # Pad features 19 -> 32 and batch -> multiple of the tile (zero rows are
    # computed but sliced away below).
    x = jnp.pad(x, ((0, b_pad - B), (0, F_IN_PAD - F_IN))).astype(compute_dtype)

    grid = (b_pad // tb,)
    resident = lambda i: (0, 0)  # weights/biases stay VMEM-resident

    itemsize = jnp.dtype(compute_dtype).itemsize
    param_bytes = sum(
        int(a.size) * a.dtype.itemsize
        for pair in ((w1, b1), (w2, b2), (w3, b3), (w4, b4)) for a in pair)
    flops = 2 * b_pad * (F_IN_PAD * F_H + F_H * F_H + F_H * F_H + F_H * F_OUT_PAD)
    bytes_accessed = (b_pad * F_IN_PAD * itemsize          # x in
                      + param_bytes                        # weights + biases
                      + b_pad * F_OUT_PAD * 4)             # f32 out

    out = pl.pallas_call(
        _mlp_kernel,
        out_shape=jax.ShapeDtypeStruct((b_pad, F_OUT_PAD), jnp.float32),
        grid=grid,
        in_specs=[
            pl.BlockSpec((tb, F_IN_PAD), lambda i: (i, 0)),
            pl.BlockSpec((F_IN_PAD, F_H), resident),
            pl.BlockSpec((1, F_H), resident),
            pl.BlockSpec((F_H, F_H), resident),
            pl.BlockSpec((1, F_H), resident),
            pl.BlockSpec((F_H, F_H), resident),
            pl.BlockSpec((1, F_H), resident),
            pl.BlockSpec((F_H, F_OUT_PAD), resident),
            pl.BlockSpec((1, F_OUT_PAD), resident),
        ],
        out_specs=pl.BlockSpec((tb, F_OUT_PAD), lambda i: (i, 0)),
        compiler_params=pltpu.CompilerParams(
            dimension_semantics=("parallel",)),
        cost_estimate=pl.CostEstimate(flops=flops,
                                      bytes_accessed=bytes_accessed,
                                      transcendentals=0),
    )(x, w1, b1, w2, b2, w3, b3, w4, b4)

    # Slice back to the true (B, 9) output (padded rows/cols are discarded).
    return out[:B, :F_OUT]


def _reference_forward(u, v, d, intrinsics, extrinsics, params,
                       compute_dtype=jnp.bfloat16):
    """Pure-JAX reference with the same bf16-operand / f32-accumulate math."""
    x = jnp.concatenate([u, v, d, intrinsics, extrinsics], axis=1)
    (w1, b1), (w2, b2), (w3, b3), (w4, b4) = params

    def lin(h, w, b):
        return (jnp.dot(h.astype(compute_dtype), w.astype(compute_dtype),
                        preferred_element_type=jnp.float32)
                + b.reshape(1, -1).astype(jnp.float32))

    h = jnp.maximum(lin(x, w1, b1), 0.0)
    h = jnp.maximum(lin(h, w2, b2), 0.0)
    h = jnp.maximum(lin(h, w3, b3), 0.0)
    return lin(h, w4, b4)


if __name__ == "__main__":
    key = jax.random.PRNGKey(0)
    k_u, k_v, k_d, k_in, k_ex, k_p = jax.random.split(key, 6)

    B = 8
    u = jax.random.normal(k_u, (B, 1), jnp.float32)
    v = jax.random.normal(k_v, (B, 1), jnp.float32)
    d = jax.random.normal(k_d, (B, 1), jnp.float32)
    intrinsics = jax.random.normal(k_in, (B, 4), jnp.float32)
    extrinsics = jax.random.normal(k_ex, (B, 12), jnp.float32)

    params = init_params(k_p)

    out = ellipsoid_net_forward(u, v, d, intrinsics, extrinsics, params)
    out = jax.block_until_ready(out)

    ref = _reference_forward(u, v, d, intrinsics, extrinsics, params)
    assert out.shape == (B, 9)
    assert jnp.allclose(out, ref, atol=2e-2, rtol=2e-2), float(
        jnp.max(jnp.abs(out - ref)))

    print("KERNEL_OK")
</pallas_src>

<mosaic_0001>
module attributes {stable_mosaic.version = 11 : i64} {
  func.func @_mlp_kernel(%arg0: i32, %arg1: memref<16x32xbf16, #tpu.memory_space<vmem>>, %arg2: memref<32x128xbf16, #tpu.memory_space<vmem>>, %arg3: memref<1x128xf32, #tpu.memory_space<vmem>>, %arg4: memref<128x128xbf16, #tpu.memory_space<vmem>>, %arg5: memref<1x128xf32, #tpu.memory_space<vmem>>, %arg6: memref<128x128xbf16, #tpu.memory_space<vmem>>, %arg7: memref<1x128xf32, #tpu.memory_space<vmem>>, %arg8: memref<128x128xbf16, #tpu.memory_space<vmem>>, %arg9: memref<1x128xf32, #tpu.memory_space<vmem>>, %arg10: memref<16x128xf32, #tpu.memory_space<vmem>>) attributes {dimension_semantics = [#tpu.dimension_semantics<parallel>], iteration_bounds = array<i64: 1>, scalar_prefetch = 0 : i64, scratch_operands = 0 : i64, tpu.core_type = #tpu.core_type<tc>, window_params = [{transform_indices = @transform_0, window_bounds = array<i64: 16, 32>}, {pipeline_mode = #tpu.pipeline_mode<synchronous>, transform_indices = @transform_1, window_bounds = array<i64: 32, 128>}, {pipeline_mode = #tpu.pipeline_mode<synchronous>, transform_indices = @transform_2, window_bounds = array<i64: 1, 128>}, {pipeline_mode = #tpu.pipeline_mode<synchronous>, transform_indices = @transform_3, window_bounds = array<i64: 128, 128>}, {pipeline_mode = #tpu.pipeline_mode<synchronous>, transform_indices = @transform_4, window_bounds = array<i64: 1, 128>}, {pipeline_mode = #tpu.pipeline_mode<synchronous>, transform_indices = @transform_5, window_bounds = array<i64: 128, 128>}, {pipeline_mode = #tpu.pipeline_mode<synchronous>, transform_indices = @transform_6, window_bounds = array<i64: 1, 128>}, {pipeline_mode = #tpu.pipeline_mode<synchronous>, transform_indices = @transform_7, window_bounds = array<i64: 128, 128>}, {pipeline_mode = #tpu.pipeline_mode<synchronous>, transform_indices = @transform_8, window_bounds = array<i64: 1, 128>}, {transform_indices = @transform_9, window_bounds = array<i64: 16, 128>}]} {
    %c0 = arith.constant 0 : index
    %c0_0 = arith.constant 0 : index
    %0 = vector.load %arg1[%c0, %c0_0] : memref<16x32xbf16, #tpu.memory_space<vmem>>, vector<16x32xbf16>
    %c0_1 = arith.constant 0 : index
    %c0_2 = arith.constant 0 : index
    %1 = vector.load %arg2[%c0_1, %c0_2] : memref<32x128xbf16, #tpu.memory_space<vmem>>, vector<32x128xbf16>
    %cst = arith.constant dense<0.000000e+00> : vector<16x128xf32>
    %2 = tpu.matmul %0, %1, %cst {dimension_numbers = #tpu.dot_dimension_numbers<[1], [0], [0], [1], [0, 0, 1, 1], [], []>} : vector<16x32xbf16>, vector<32x128xbf16>, vector<16x128xf32> -> vector<16x128xf32>
    %c0_3 = arith.constant 0 : index
    %c0_4 = arith.constant 0 : index
    %3 = vector.load %arg3[%c0_3, %c0_4] : memref<1x128xf32, #tpu.memory_space<vmem>>, vector<1x128xf32>
    %4 = vector.broadcast %3 : vector<1x128xf32> to vector<16x128xf32>
    %5 = arith.addf %2, %4 : vector<16x128xf32>
    %cst_5 = arith.constant 0.000000e+00 : f32
    %6 = vector.broadcast %cst_5 : f32 to vector<16x128xf32>
    %7 = arith.maximumf %5, %6 : vector<16x128xf32>
    %8 = arith.truncf %7 : vector<16x128xf32> to vector<16x128xbf16>
    %c0_6 = arith.constant 0 : index
    %c0_7 = arith.constant 0 : index
    %9 = vector.load %arg4[%c0_6, %c0_7] : memref<128x128xbf16, #tpu.memory_space<vmem>>, vector<128x128xbf16>
    %cst_8 = arith.constant dense<0.000000e+00> : vector<16x128xf32>
    %10 = tpu.matmul %8, %9, %cst_8 {dimension_numbers = #tpu.dot_dimension_numbers<[1], [0], [0], [1], [0, 0, 1, 1], [], []>} : vector<16x128xbf16>, vector<128x128xbf16>, vector<16x128xf32> -> vector<16x128xf32>
    %c0_9 = arith.constant 0 : index
    %c0_10 = arith.constant 0 : index
    %11 = vector.load %arg5[%c0_9, %c0_10] : memref<1x128xf32, #tpu.memory_space<vmem>>, vector<1x128xf32>
    %12 = vector.broadcast %11 : vector<1x128xf32> to vector<16x128xf32>
    %13 = arith.addf %10, %12 : vector<16x128xf32>
    %cst_11 = arith.constant 0.000000e+00 : f32
    %14 = vector.broadcast %cst_11 : f32 to vector<16x128xf32>
    %15 = arith.maximumf %13, %14 : vector<16x128xf32>
    %16 = arith.truncf %15 : vector<16x128xf32> to vector<16x128xbf16>
    %c0_12 = arith.constant 0 : index
    %c0_13 = arith.constant 0 : index
    %17 = vector.load %arg6[%c0_12, %c0_13] : memref<128x128xbf16, #tpu.memory_space<vmem>>, vector<128x128xbf16>
    %cst_14 = arith.constant dense<0.000000e+00> : vector<16x128xf32>
    %18 = tpu.matmul %16, %17, %cst_14 {dimension_numbers = #tpu.dot_dimension_numbers<[1], [0], [0], [1], [0, 0, 1, 1], [], []>} : vector<16x128xbf16>, vector<128x128xbf16>, vector<16x128xf32> -> vector<16x128xf32>
    %c0_15 = arith.constant 0 : index
    %c0_16 = arith.constant 0 : index
    %19 = vector.load %arg7[%c0_15, %c0_16] : memref<1x128xf32, #tpu.memory_space<vmem>>, vector<1x128xf32>
    %20 = vector.broadcast %19 : vector<1x128xf32> to vector<16x128xf32>
    %21 = arith.addf %18, %20 : vector<16x128xf32>
    %cst_17 = arith.constant 0.000000e+00 : f32
    %22 = vector.broadcast %cst_17 : f32 to vector<16x128xf32>
    %23 = arith.maximumf %21, %22 : vector<16x128xf32>
    %24 = arith.truncf %23 : vector<16x128xf32> to vector<16x128xbf16>
    %c0_18 = arith.constant 0 : index
    %c0_19 = arith.constant 0 : index
    %25 = vector.load %arg8[%c0_18, %c0_19] : memref<128x128xbf16, #tpu.memory_space<vmem>>, vector<128x128xbf16>
    %cst_20 = arith.constant dense<0.000000e+00> : vector<16x128xf32>
    %26 = tpu.matmul %24, %25, %cst_20 {dimension_numbers = #tpu.dot_dimension_numbers<[1], [0], [0], [1], [0, 0, 1, 1], [], []>} : vector<16x128xbf16>, vector<128x128xbf16>, vector<16x128xf32> -> vector<16x128xf32>
    %c0_21 = arith.constant 0 : index
    %c0_22 = arith.constant 0 : index
    %27 = vector.load %arg9[%c0_21, %c0_22] : memref<1x128xf32, #tpu.memory_space<vmem>>, vector<1x128xf32>
    %28 = vector.broadcast %27 : vector<1x128xf32> to vector<16x128xf32>
    %29 = arith.addf %26, %28 : vector<16x128xf32>
    %c0_23 = arith.constant 0 : index
    %c0_24 = arith.constant 0 : index
    %30 = vector.load %arg10[%c0_23, %c0_24] : memref<16x128xf32, #tpu.memory_space<vmem>>, vector<16x128xf32>
    tpu.vector_store %arg10[%c0_23, %c0_24], %29 {strides = array<i32>} : memref<16x128xf32, #tpu.memory_space<vmem>>, vector<16x128xf32>,
    return
  }
  func.func @transform_0(%arg0: i32) -> (i32, i32) {
    %c0_i32 = arith.constant 0 : i32
    %c0_i32_0 = arith.constant 0 : i32
    return %arg0, %c0_i32 : i32, i32
  }
  func.func @transform_1(%arg0: i32) -> (i32, i32) {
    %c0_i32 = arith.constant 0 : i32
    %c0_i32_0 = arith.constant 0 : i32
    %c0_i32_1 = arith.constant 0 : i32
    return %c0_i32, %c0_i32_0 : i32, i32
  }
  func.func @transform_2(%arg0: i32) -> (i32, i32) {
    %c0_i32 = arith.constant 0 : i32
    %c0_i32_0 = arith.constant 0 : i32
    %c0_i32_1 = arith.constant 0 : i32
    return %c0_i32, %c0_i32_0 : i32, i32
  }
  func.func @transform_3(%arg0: i32) -> (i32, i32) {
    %c0_i32 = arith.constant 0 : i32
    %c0_i32_0 = arith.constant 0 : i32
    %c0_i32_1 = arith.constant 0 : i32
    return %c0_i32, %c0_i32_0 : i32, i32
  }
  func.func @transform_4(%arg0: i32) -> (i32, i32) {
    %c0_i32 = arith.constant 0 : i32
    %c0_i32_0 = arith.constant 0 : i32
    %c0_i32_1 = arith.constant 0 : i32
    return %c0_i32, %c0_i32_0 : i32, i32
  }
  func.func @transform_5(%arg0: i32) -> (i32, i32) {
    %c0_i32 = arith.constant 0 : i32
    %c0_i32_0 = arith.constant 0 : i32
    %c0_i32_1 = arith.constant 0 : i32
    return %c0_i32, %c0_i32_0 : i32, i32
  }
  func.func @transform_6(%arg0: i32) -> (i32, i32) {
    %c0_i32 = arith.constant 0 : i32
    %c0_i32_0 = arith.constant 0 : i32
    %c0_i32_1 = arith.constant 0 : i32
    return %c0_i32, %c0_i32_0 : i32, i32
  }
  func.func @transform_7(%arg0: i32) -> (i32, i32) {
    %c0_i32 = arith.constant 0 : i32
    %c0_i32_0 = arith.constant 0 : i32
    %c0_i32_1 = arith.constant 0 : i32
    return %c0_i32, %c0_i32_0 : i32, i32
  }
  func.func @transform_8(%arg0: i32) -> (i32, i32) {
    %c0_i32 = arith.constant 0 : i32
    %c0_i32_0 = arith.constant 0 : i32
    %c0_i32_1 = arith.constant 0 : i32
    return %c0_i32, %c0_i32_0 : i32, i32
  }
  func.func @transform_9(%arg0: i32) -> (i32, i32) {
    %c0_i32 = arith.constant 0 : i32
    %c0_i32_0 = arith.constant 0 : i32
    return %arg0, %c0_i32 : i32, i32
  }
}

</mosaic_0001>

<bundles_post_ra>
// kernel: tpu_custom_call.1
= control target key start
LH: loop header
LB: loop body
LE: loop exit
PB: predicated region body
PF: predicated region fallthrough
CT: control target
= control target key end

     0   :  { %14 = vsyncpa [#allocation3], 0  ;;  %s1061_s0 = inlined_call_operand.hbm [shape: bf16[16,32], index: 0, kind: input, shape index: {}]   ;;  %s1062_s1 = inlined_call_operand.hbm [shape: bf16[32,128], index: 1, kind: input, shape index: {}]   ;;  %s1063_s2 = inlined_call_operand.vmem [shape: f32[1,128], index: 2, kind: input, shape index: {}]   ;;  %s1064_s3 = inlined_call_operand.hbm [shape: bf16[128,128], index: 3, kind: input, shape index: {}]   ;;  %s1065_s4 = inlined_call_operand.vmem [shape: f32[1,128], index: 4, kind: input, shape index: {}]   ;;  %s1066_s5 = inlined_call_operand.hbm [shape: bf16[128,128], index: 5, kind: input, shape index: {}]   ;;  %s1067_s6 = inlined_call_operand.vmem [shape: f32[1,128], index: 6, kind: input, shape index: {}]   ;;  %s1068_s7 = inlined_call_operand.hbm [shape: bf16[128,128], index: 7, kind: input, shape index: {}]   ;;  %s1069_s8 = inlined_call_operand.vmem [shape: f32[1,128], index: 8, kind: input, shape index: {}]   ;;  %s1070_s9 = inlined_call_operand.hbm [shape: f32[16,128], index: 9, kind: output, shape index: {}]  }
   0x1   :  { %15 = vsyncpa [#allocation6], 0 }
   0x2   :  { %16 = vsyncpa [#allocation9], 0 }
   0x3   :  { %17 = vsyncpa [#allocation4], 0  ;;  %s852_s30 = smov [#allocation5]   ;;  %s853_s11 = smov [#allocation8]  }
   0x4   :  { %s35_s10 = sshll.u32 %s852_s30, 4  ;;  %s63_s12 = sshll.u32 %s853_s11, 4  ;;  %s36_s10 = int_to_ptr.vmem [resolvable:$true] %s35_s10  ;;  %s914_s12 = int_to_ptr.vmem [resolvable:$true] %s63_s12 }
   0x5   :  { %s712_s15 = scalar_lea.hbm %s1062_s1, 256 }
   0x6   :  { %p713_p0 = scmp.ne.s32.totalorder %s1062_s1, %s712_s15  ;;  %p716_p1 = scmp.lt.u32.totalorder %s712_s15, %s1062_s1 }
   0x8   :  { %p718_p2 = pnand %p716_p1, %p713_p0 }
   0xa   :  { %721 = shalt.err (!%p718_p2)
}
   0xb   :  { %s722_s20 = scalar_lea.vmem %s36_s10, 256  ;;  %p727_p4 = scmp.lt.s32.totalorder %s36_s10, %s36_s10 }
   0xc   :  { %p723_p3 = scmp.ne.s32.totalorder %s36_s10, %s722_s20  ;;  %p728_p5 = scmp.lt.s32.totalorder %s722_s20, %s722_s20 }
   0xe   :  { %p729_p6 = por %p728_p5, %p727_p4 }
  0x10   :  { %p730_p7 = pnand %p729_p6, %p723_p3 }
  0x12   :  { %733 = shalt.err (!%p730_p7)
}
  0x13   :  { %s854_s21 = smov 64   ;;  %s855_s22 = smov 4  }
  0x14   :  { %41 = dma.hbm_to_vmem [thread:$0]  %s1062_s1, 256, %s36_s10, [#allocation6], %s854_s21, %s854_s21, %s855_s22  }
  0x15   :  { %s734_s27 = scalar_lea.hbm %s1066_s5, 1024 }
  0x16   :  { %p735_p8 = scmp.ne.s32.totalorder %s1066_s5, %s734_s27  ;;  %p738_p9 = scmp.lt.u32.totalorder %s734_s27, %s1066_s5 }
  0x18   :  { %p740_p10 = pnand %p738_p9, %p735_p8 }
  0x1a   :  { %743 = shalt.err (!%p740_p10)
}
  0x1b   :  { %s744_s13 = scalar_lea.vmem %s914_s12, 1024  ;;  %p749_p12 = scmp.lt.s32.totalorder %s914_s12, %s914_s12 }
  0x1c   :  { %p745_p11 = scmp.ne.s32.totalorder %s914_s12, %s744_s13  ;;  %p750_p13 = scmp.lt.s32.totalorder %s744_s13, %s744_s13 }
  0x1e   :  { %p751_p0 = por %p750_p13, %p749_p12 }
  0x20   :  { %p752_p1 = pnand %p751_p0, %p745_p11 }
  0x22   :  { %755 = shalt.err (!%p752_p1)
}
  0x23   :  { %69 = dma.hbm_to_vmem [thread:$0]  %s1066_s5, 1024, %s914_s12, [#allocation9], %s854_s21, %s854_s21, %s855_s22  }
  0x24   :  { %s856_s14 = smov [#allocation2]   ;;  %s857_s16 = smov [#allocation7]  }
  0x25   :  { %s23_s15 = sshll.u32 %s856_s14, 4  ;;  %s49_s17 = sshll.u32 %s857_s16, 4  ;;  %s24_s15 = int_to_ptr.vmem [resolvable:$true] %s23_s15  ;;  %s951_s17 = int_to_ptr.vmem [resolvable:$true] %s49_s17 }
  0x26   :  { %s756_s20 = scalar_lea.hbm %s1061_s0, 128 }
  0x27   :  { %p757_p2 = scmp.ne.s32.totalorder %s1061_s0, %s756_s20  ;;  %p760_p3 = scmp.lt.u32.totalorder %s756_s20, %s1061_s0 }
  0x29   :  { %p762_p4 = pnand %p760_p3, %p757_p2 }
  0x2b   :  { %765 = shalt.err (!%p762_p4)
}
  0x2c   :  { %s766_s5 = scalar_lea.vmem %s24_s15, 128  ;;  %p771_p6 = scmp.lt.s32.totalorder %s24_s15, %s24_s15 }
  0x2d   :  { %p767_p5 = scmp.ne.s32.totalorder %s24_s15, %s766_s5  ;;  %p772_p7 = scmp.lt.s32.totalorder %s766_s5, %s766_s5 }
  0x2f   :  { %p773_p8 = por %p772_p7, %p771_p6 }
  0x31   :  { %p774_p9 = pnand %p773_p8, %p767_p5 }
  0x33   :  { %777 = shalt.err (!%p774_p9)
}
  0x34   :  { %29 = dma.hbm_to_vmem [thread:$0]  %s1061_s0, 128, %s24_s15, [#allocation3], %s854_s21, %s854_s21, %s855_s22  }
  0x35   :  { %s778_s30 = scalar_lea.hbm %s1064_s3, 1024 }
  0x36   :  { %p779_p10 = scmp.ne.s32.totalorder %s1064_s3, %s778_s30  ;;  %p782_p11 = scmp.lt.u32.totalorder %s778_s30, %s1064_s3 }
  0x38   :  { %p784_p12 = pnand %p782_p11, %p779_p10 }
  0x3a   :  { %787 = shalt.err (!%p784_p12)
}
  0x3b   :  { %s788_s14 = scalar_lea.vmem %s951_s17, 1024  ;;  %p793_p0 = scmp.lt.s32.totalorder %s951_s17, %s951_s17 }
  0x3c   :  { %p789_p13 = scmp.ne.s32.totalorder %s951_s17, %s788_s14  ;;  %p794_p1 = scmp.lt.s32.totalorder %s788_s14, %s788_s14 }
  0x3e   :  { %p795_p2 = por %p794_p1, %p793_p0 }
  0x40   :  { %p796_p3 = pnand %p795_p2, %p789_p13 }
  0x42   :  { %799 = shalt.err (!%p796_p3)
}
  0x43   :  { %55 = dma.hbm_to_vmem [thread:$0]  %s1064_s3, 1024, %s951_s17, [#allocation6], %s854_s21, %s854_s21, %s855_s22  }
  0x44   :  { %s858_s16 = smov [#allocation10]   ;;  %s800_s23 = scalar_lea.hbm %s1068_s7, 1024 }
  0x45   :  { %s77_s18 = sshll.u32 %s858_s16, 4  ;;  %p801_p4 = scmp.ne.s32.totalorder %s1068_s7, %s800_s23  ;;  %s78_s18 = int_to_ptr.vmem [resolvable:$true] %s77_s18 }
  0x46   :  { %p804_p5 = scmp.lt.u32.totalorder %s800_s23, %s1068_s7 }
  0x48   :  { %p806_p6 = pnand %p804_p5, %p801_p4 }
  0x4a   :  { %809 = shalt.err (!%p806_p6)
}
  0x4b   :  { %s810_s12 = scalar_lea.vmem %s78_s18, 1024  ;;  %p815_p8 = scmp.lt.s32.totalorder %s78_s18, %s78_s18 }
  0x4c   :  { %p811_p7 = scmp.ne.s32.totalorder %s78_s18, %s810_s12  ;;  %p816_p9 = scmp.lt.s32.totalorder %s810_s12, %s810_s12 }
  0x4e   :  { %p817_p10 = por %p816_p9, %p815_p8 }
  0x50   :  { %p818_p11 = pnand %p817_p10, %p811_p7 }
  0x52   :  { %821 = shalt.err (!%p818_p11)
}
  0x53   :  { %83 = dma.hbm_to_vmem [thread:$0]  %s1068_s7, 1024, %s78_s18, [#allocation9], %s854_s21, %s854_s21, %s855_s22  }
  0x54   :  { %844 = dma.done.wait [#allocation3], 128  }
  0x55   :  { %845 = vsyncadd [#allocation3], 4294967168 }
  0x56   :  { %846 = dma.done.wait [#allocation6], 1280  }
  0x57   :  { %847 = vsyncadd [#allocation6], 4294966016 }
  0x58   :  { %848 = dma.done.wait [#allocation9], 2048  }
  0x59   :  { %849 = vsyncadd [#allocation9], 4294965248  ;;  %v859_v0 = vmov 0.0   ;;  %vm860_vm0 = vmmov 0   ;;  %v685_v1 = vld [vmem:[#allocation5] sm:$0xff]   ;;  %v686_v2 = vld [vmem:[#allocation5 + $0x8] sm:$0xff]  }
  0x5a   :  { %605 = vmatprep.subr.bf16.mxu0 %v859_v0  ;;  %609 = vmatprep.mubr.msk.bf16.mxu0 %vm860_vm0, %v859_v0  ;;  %v688_v3 = vld [vmem:[#allocation7] sm:$0xff]   ;;  %v687_v4 = vld [vmem:[#allocation2] sm:$0xff]   ;;  %vm132_vm1 = vcmask 261120   ;;  %v690_v6 = vld [vmem:[#allocation7 + $0x10] sm:$0xff]   ;;  %s861_s30 = smov [#allocation11]  }
  0x5b   :  { %613 = vmatprep.subr.bf16.mxu1 %v859_v0  ;;  %629 = vmatprep.mubr.msk.bf16.mxu1 %vm860_vm0, %v859_v0  ;;  %v689_v5 = vld [vmem:[#allocation7 + $0x8] sm:$0xff]   ;;  %v691_v7 = vld [vmem:[#allocation7 + $0x18] sm:$0xff]   ;;  %v692_v8 = vld [vmem:[#allocation7 + $0x20] sm:$0xff]   ;;  %s529_s11 = sshll.u32 %s861_s30, 4  ;;  %s530_s11 = int_to_ptr.vmem [resolvable:$true] %s529_s11 }
  0x5c   :  { %606 = vmatpush3.bf16.msra.mxu0 %v685_v1  ;;  %614 = vmatpush3.bf16.msra.mxu1 %v688_v3  ;;  %v693_v9 = vld [vmem:[#allocation7 + $0x28] sm:$0xff]   ;;  %v694_v10 = vld [vmem:[#allocation7 + $0x30] sm:$0xff]   ;;  %v695_v11 = vld [vmem:[#allocation7 + $0x38] sm:$0xff]   ;;  %p827_p13 = scmp.lt.s32.totalorder %s530_s11, %s530_s11 }
  0x5d   :  { %607 = vmatprep.subr.bf16.mxu0 %v859_v0  ;;  %615 = vmatprep.subr.bf16.mxu1 %v859_v0  ;;  %v696_v12 = vld [vmem:[#allocation8] sm:$0xff]   ;;  %v697_v13 = vld [vmem:[#allocation8 + $0x8] sm:$0xff]   ;;  %v698_v14 = vld [vmem:[#allocation8 + $0x10] sm:$0xff]  }
  0x5e   :  { %v699_v15 = vld [vmem:[#allocation8 + $0x18] sm:$0xff]   ;;  %v700_v16 = vld [vmem:[#allocation8 + $0x20] sm:$0xff]   ;;  %v701_v17 = vld [vmem:[#allocation8 + $0x28] sm:$0xff]  }
  0x5f   :  { %v543_v18 = vld [vmem:[%s1063_s2] ss:$0 sm:$0xff]  ;;  %v702_v28 = vld [vmem:[#allocation8 + $0x30] sm:$0xff]   ;;  %v703_v29 = vld [vmem:[#allocation8 + $0x38] sm:$0xff]  }
  0x60   :  { %608 = vmatpush3.bf16.msra.mxu0 %v686_v2  ;;  %616 = vmatpush3.bf16.msra.mxu1 %v689_v5  ;;  %v704_v30 = vld [vmem:[#allocation10] sm:$0xff]   ;;  %v705_v31 = vld [vmem:[#allocation10 + $0x8] sm:$0xff]   ;;  %v706_v32 = vld [vmem:[#allocation10 + $0x10] sm:$0xff]  }
  0x61   :  { %633 = vmatprep.subr.bf16.mxu0 %v859_v0  ;;  %617 = vmatprep.subr.bf16.mxu1 %v859_v0  ;;  %v707_v33 = vld [vmem:[#allocation10 + $0x18] sm:$0xff]   ;;  %v708_v34 = vld [vmem:[#allocation10 + $0x20] sm:$0xff]   ;;  %v709_v35 = vld [vmem:[#allocation10 + $0x28] sm:$0xff]  }
  0x62   :  { %v548_v36 = vld [vmem:[%s1065_s4] ss:$0 sm:$0xff]  ;;  %v710_v46 = vld [vmem:[#allocation10 + $0x30] sm:$0xff]   ;;  %v711_v47 = vld [vmem:[#allocation10 + $0x38] sm:$0xff]  }
  0x63   :  { %610 = vmatmul.mubr.msk.bf16.vlgmr.msra.gmra.mrb[0].mxu0 %vm132_vm1, %v687_v4  ;;  %v557_v48 = vld [vmem:[%s1067_s6] ss:$0 sm:$0xff]  ;;  %s822_s6 = scalar_lea.vmem %s530_s11, 256 }
  0x64   :  { %649 = vmatprep.mubr.msk.bf16.mxu0 %vm860_vm0, %v859_v0  ;;  %618 = vmatpush3.bf16.msra.mxu1 %v690_v6  ;;  %v566_v58 = vld [vmem:[%s1069_s8] ss:$0 sm:$0xff]  ;;  %p823_p12 = scmp.ne.s32.totalorder %s530_s11, %s822_s6  ;;  %p828_p0 = scmp.lt.s32.totalorder %s822_s6, %s822_s6 }
  0x65   :  { %619 = vmatprep.subr.bf16.mxu1 %v859_v0  ;;  %634 = vmatpush3.bf16.msra.mxu0 %v696_v12 }
  0x66   :  { %635 = vmatprep.subr.bf16.mxu0 %v859_v0  ;;  %p829_p1 = por %p828_p0, %p827_p13 }
  0x68   :  { %620 = vmatpush3.bf16.msra.mxu1 %v691_v7  ;;  %p830_p2 = pnand %p829_p1, %p823_p12 }
  0x69   :  { %621 = vmatprep.subr.bf16.mxu1 %v859_v0  ;;  %636 = vmatpush3.bf16.msra.mxu0 %v697_v13 }
  0x6a   :  { %637 = vmatprep.subr.bf16.mxu0 %v859_v0 }
  0x6c   :  { %622 = vmatpush3.bf16.msra.mxu1 %v692_v8 }
  0x6d   :  { %623 = vmatprep.subr.bf16.mxu1 %v859_v0  ;;  %638 = vmatpush3.bf16.msra.mxu0 %v698_v14 }
  0x6e   :  { %639 = vmatprep.subr.bf16.mxu0 %v859_v0 }
  0x70   :  { %624 = vmatpush3.bf16.msra.mxu1 %v693_v9 }
  0x71   :  { %625 = vmatprep.subr.bf16.mxu1 %v859_v0  ;;  %640 = vmatpush3.bf16.msra.mxu0 %v699_v15 }
  0x72   :  { %641 = vmatprep.subr.bf16.mxu0 %v859_v0 }
  0x74   :  { %626 = vmatpush3.bf16.msra.mxu1 %v694_v10 }
  0x75   :  { %627 = vmatprep.subr.bf16.mxu1 %v859_v0  ;;  %642 = vmatpush3.bf16.msra.mxu0 %v700_v16 }
  0x76   :  { %643 = vmatprep.subr.bf16.mxu0 %v859_v0 }
  0x78   :  { %628 = vmatpush3.bf16.msra.mxu1 %v695_v11 }
  0x79   :  { %653 = vmatprep.subr.bf16.mxu1 %v859_v0  ;;  %644 = vmatpush3.bf16.msra.mxu0 %v701_v17 }
  0x7a   :  { %645 = vmatprep.subr.bf16.mxu0 %v859_v0 }
  0x7d   :  { %646 = vmatpush3.bf16.msra.mxu0 %v702_v28 }
  0x7e   :  { %647 = vmatprep.subr.bf16.mxu0 %v859_v0 }
  0x81   :  { %648 = vmatpush3.bf16.msra.mxu0 %v703_v29 }
 0x136   :  { %v170_v19 = vpop.f32.mrb[0].mxu0 }
 0x137   :  { %v171_v20 = vadd.f32 %v543_v18, %v170_v19  ;;  %v611_v21 = vpop.f32.mrb[1].mxu0 }
 0x138   :  { %v173_v22 = vpop.f32.mrb[2].mxu0 }
 0x139   :  { %v174_v23 = vadd.f32 %v543_v18, %v173_v22  ;;  %v612_v24 = vpop.f32.mrb[3].mxu0  ;;  %v177_v25 = vmax.f32 %v171_v20, 0.0 }
 0x13b   :  { %v178_v26 = vmax.f32 %v174_v23, 0.0 }
 0x13d   :  { %v179_v27 = vpack.c.bf16 %v178_v26, %v177_v25 }
 0x13f   :  { %630 = vmatmul.mubr.bf16.vlgmr.msra.gmra.mrb[0].mxu1 %v179_v27 }
 0x140   :  { %669 = vmatprep.mubr.msk.bf16.mxu1 %vm860_vm0, %v859_v0  ;;  %654 = vmatpush3.bf16.msra.mxu1 %v704_v30 }
 0x141   :  { %655 = vmatprep.subr.bf16.mxu1 %v859_v0 }
 0x144   :  { %656 = vmatpush3.bf16.msra.mxu1 %v705_v31 }
 0x145   :  { %657 = vmatprep.subr.bf16.mxu1 %v859_v0 }
 0x148   :  { %658 = vmatpush3.bf16.msra.mxu1 %v706_v32 }
 0x149   :  { %659 = vmatprep.subr.bf16.mxu1 %v859_v0 }
 0x14c   :  { %660 = vmatpush3.bf16.msra.mxu1 %v707_v33 }
 0x14d   :  { %661 = vmatprep.subr.bf16.mxu1 %v859_v0 }
 0x150   :  { %662 = vmatpush3.bf16.msra.mxu1 %v708_v34 }
 0x151   :  { %663 = vmatprep.subr.bf16.mxu1 %v859_v0 }
 0x154   :  { %664 = vmatpush3.bf16.msra.mxu1 %v709_v35 }
 0x155   :  { %665 = vmatprep.subr.bf16.mxu1 %v859_v0 }
 0x158   :  { %666 = vmatpush3.bf16.msra.mxu1 %v710_v46 }
 0x159   :  { %667 = vmatprep.subr.bf16.mxu1 %v859_v0 }
 0x15c   :  { %668 = vmatpush3.bf16.msra.mxu1 %v711_v47 }
 0x212   :  { %v285_v37 = vpop.f32.mrb[0].mxu1 }
 0x213   :  { %v286_v38 = vadd.f32 %v548_v36, %v285_v37  ;;  %v631_v39 = vpop.f32.mrb[1].mxu1 }
 0x214   :  { %v288_v40 = vpop.f32.mrb[2].mxu1 }
 0x215   :  { %v289_v41 = vadd.f32 %v548_v36, %v288_v40  ;;  %v632_v42 = vpop.f32.mrb[3].mxu1  ;;  %v292_v43 = vmax.f32 %v286_v38, 0.0 }
 0x217   :  { %v293_v44 = vmax.f32 %v289_v41, 0.0 }
 0x219   :  { %v294_v45 = vpack.c.bf16 %v293_v44, %v292_v43 }
 0x21b   :  { %650 = vmatmul.mubr.bf16.vlgmr.msra.gmra.mrb[4].mxu0 %v294_v45 }
 0x2ee   :  { %v400_v49 = vpop.f32.mrb[4].mxu0 }
 0x2ef   :  { %v401_v50 = vadd.f32 %v557_v48, %v400_v49  ;;  %v651_v51 = vpop.f32.mrb[5].mxu0 }
 0x2f0   :  { %v403_v52 = vpop.f32.mrb[6].mxu0 }
 0x2f1   :  { %v404_v53 = vadd.f32 %v557_v48, %v403_v52  ;;  %v652_v54 = vpop.f32.mrb[7].mxu0  ;;  %v407_v55 = vmax.f32 %v401_v50, 0.0 }
 0x2f3   :  { %v408_v56 = vmax.f32 %v404_v53, 0.0 }
 0x2f5   :  { %v409_v57 = vpack.c.bf16 %v408_v56, %v407_v55 }
 0x2f7   :  { %670 = vmatmul.mubr.bf16.vlgmr.msra.gmra.mrb[4].mxu1 %v409_v57 }
 0x3ca   :  { %v515_v59 = vpop.f32.mrb[4].mxu1 }
 0x3cb   :  { %v516_v60 = vadd.f32 %v566_v58, %v515_v59  ;;  %v671_v61 = vpop.f32.mrb[5].mxu1 }
 0x3cc   :  { %v518_v62 = vpop.f32.mrb[6].mxu1 }
 0x3cd   :  { %522 = vst [vmem:[#allocation11] sm:$0xff] %v516_v60  ;;  %v519_v63 = vadd.f32 %v566_v58, %v518_v62  ;;  %v672_v0 = vpop.f32.mrb[7].mxu1 }
 0x3cf   :  { %523 = vst [vmem:[#allocation11 + $0x8] sm:$0xff] %v519_v63 }
 0x3d0   :  { %833 = shalt.err (!%p830_p2)
}
 0x3d1   :  { %s834_s1 = scalar_lea.hbm %s1070_s9, 256 }
 0x3d2   :  { %p835_p3 = scmp.ne.s32.totalorder %s1070_s9, %s834_s1  ;;  %p838_p4 = scmp.lt.u32.totalorder %s834_s1, %s1070_s9 }
 0x3d4   :  { %p840_p5 = pnand %p838_p4, %p835_p3 }
 0x3d6   :  { %843 = shalt.err (!%p840_p5)
}
 0x3d7   :  { %s862_s16 = smov 128   ;;  %s863_s18 = smov 8  }
 0x3d8   :  { %535 = dma.vmem_to_hbm [thread:$0]  %s530_s11, 256, %s1070_s9, [#allocation4], %s862_s16, %s862_s16, %s863_s18  }
 0x3d9   :  { %850 = dma.done.wait [#allocation4], 256  }
 0x3da   :  { %851 = vsyncadd [#allocation4], 4294967040 }
 0x3db   :  { %539 = vsyncpa [#allocation3], 1 }
 0x3dc   :  { %540 = vsyncpa [#allocation6], 1 }
 0x3dd   :  { %541 = vsyncpa [#allocation9], 1 }
 0x3de   :  { %542 = vsyncpa [#allocation4], 1 }

</bundles_post_ra>
